<compile_context>
chip_gen: v7x
topology: tpu7x:2x2x1
jax: 0.10.0
libtpu: 0.0.40
codegen_flags: <defaults>
</compile_context>

<pallas_src>
import math

import jax
import jax.numpy as jnp
from jax.experimental import pallas as pl
from jax.experimental.pallas import tpu as pltpu


# Tile caps: multiples of (8, 128); f32 output tile at the caps is 8 MiB.
_TILE_N_CAP = 512
_TILE_R_CAP = 4096
# erf saturates: |1 - erf(z)| < 1.6e-8 for z >= 4, so a tile whose arguments
# all lie on one side of +/-_SAT_Z is identically ~0 (far below 1e-5 atol).
_SAT_Z = 4.0


def _round_up(x, m):
    return ((x + m - 1) // m) * m


def _cdiv(a, b):
    return -(-a // b)


def _pick_tile(extent, cap, align):
    """Balanced tile: multiple of `align`, <= cap, never larger than the array
    dim (when extent >= align) so blocks never exceed the output shape."""
    if extent < align:
        return extent                       # single full-dim block (allowed)
    padded = _round_up(extent, align)
    nblocks = max(1, _cdiv(padded, cap))
    tile = _round_up(_cdiv(padded, nblocks), align)
    return min(tile, (extent // align) * align)


def _dist_gaussian_kernel(skip_ref, params_ref, vr_ref, gm_ref, o_ref):
    """One (tile_n, tile_r) output tile of 0.5*(erf((vr+dx-gm)c) - erf((vr-gm)c))."""
    i = pl.program_id(0)
    j = pl.program_id(1)
    skip = skip_ref[i * pl.num_programs(1) + j]

    @pl.when(skip != 0)
    def _zero_tile():
        # Whole tile is erf-saturated on one side: result is 0 to < 2e-8.
        # Skip both erfs -> pure lane-dense writeback.
        o_ref[...] = jnp.zeros_like(o_ref)

    @pl.when(skip == 0)
    def _compute_tile():
        dx = params_ref[0]      # runtime SMEM scalar -> no recompile per dx
        const = params_ref[1]   # 1 / (sigma * sqrt(2))
        vr = vr_ref[...]                          # (1, TR)
        gm = gm_ref[...]                          # (TN, 1)
        vr_dx = vr + dx                           # hoisted 1-D add, O(TR)
        # Same op ordering as the PyTorch reference (f32 rounding fidelity).
        zr = (vr_dx - gm) * const                 # (TN, TR)
        zl = (vr - gm) * const                    # (TN, TR)
        o_ref[...] = ((jax.lax.erf(zr) - jax.lax.erf(zl)) * 0.5).astype(o_ref.dtype)


def dist_func_gaussian(val_range, geom_mean, *, dx, sigma,
                       tile_n=None, tile_r=None, out_dtype=jnp.float32):
    """Pallas implementation of DistFuncGaussian.forward.

    val_range: (R,), geom_mean: (N,)  ->  out (N, R) in `out_dtype` (f32 default).
    dx / sigma may be Python floats or JAX scalars (kept as runtime values).
    """
    val_range = jnp.asarray(val_range, jnp.float32)
    geom_mean = jnp.asarray(geom_mean, jnp.float32)
    R = int(val_range.shape[0])
    N = int(geom_mean.shape[0])
    assert R > 0 and N > 0, "val_range and geom_mean must be non-empty 1-D arrays"

    dx_v = jnp.asarray(dx, jnp.float32)
    const = jnp.float32(1.0) / (jnp.asarray(sigma, jnp.float32) * jnp.float32(math.sqrt(2.0)))

    # ---- tile selection ----------------------------------------------------
    auto_n = tile_n is None
    auto_r = tile_r is None
    if auto_r:
        tile_r = _pick_tile(R, _TILE_R_CAP, 128)
    if auto_n:
        tile_n = _pick_tile(N, _TILE_N_CAP, 8)

    grid_n = _cdiv(N, tile_n)
    grid_r = _cdiv(R, tile_r)

    # v7x has 2 TensorCores: keep >= 2 blocks on a 'parallel' axis (prefer R).
    if grid_n * grid_r == 1:
        if auto_r and R > 128:
            tile_r = _round_up(_cdiv(R, 2), 128)
            grid_r = _cdiv(R, tile_r)
        elif auto_n and N > 8:
            tile_n = _round_up(_cdiv(N, 2), 8)
            grid_n = _cdiv(N, tile_n)

    # Validate tiles (covers user-supplied values too): (8,128)-aligned or
    # full-dim, and never larger than the array dim.
    assert tile_n == N or (tile_n > 0 and tile_n % 8 == 0 and tile_n <= N), \
        f"tile_n={tile_n} must equal N={N} or be a multiple of 8 that is <= N"
    assert tile_r == R or (tile_r > 0 and tile_r % 128 == 0 and tile_r <= R), \
        f"tile_r={tile_r} must equal R={R} or be a multiple of 128 that is <= R"

    Np = grid_n * tile_n
    Rp = grid_r * tile_r

    # ---- pad the tiny 1-D operands (O(N+R)); edge mode keeps padded values
    # finite and keeps the per-tile saturation bounds tight on edge tiles.
    vr2 = val_range[None, :]
    if Rp != R:
        vr2 = jnp.pad(vr2, ((0, 0), (0, Rp - R)), mode="edge")
    gm2 = geom_mean[:, None]
    if Np != N:
        gm2 = jnp.pad(gm2, ((0, Np - N), (0, 0)), mode="edge")

    # ---- per-tile saturation flags (cheap plain-XLA work on 1-D operands) ---
    vr_t = vr2.reshape(grid_r, tile_r)
    gm_t = gm2.reshape(grid_n, tile_n)
    vr_min = vr_t.min(axis=1)                      # (grid_r,)
    vr_max = vr_t.max(axis=1)
    gm_min = gm_t.min(axis=1)                      # (grid_n,)
    gm_max = gm_t.max(axis=1)
    dx_lo = jnp.minimum(dx_v, 0.0)
    dx_hi = jnp.maximum(dx_v, 0.0)
    z_lo = (vr_min[None, :] + dx_lo - gm_max[:, None]) * const   # (grid_n, grid_r)
    z_hi = (vr_max[None, :] + dx_hi - gm_min[:, None]) * const
    skip = jnp.logical_or(z_lo >= _SAT_Z, z_hi <= -_SAT_Z)
    skip = jnp.logical_and(skip, const > 0)        # bounds derivation assumes c > 0
    skip = skip.astype(jnp.int32).reshape(-1)      # (grid_n * grid_r,) -> SMEM

    params = jnp.stack([dx_v, const]).astype(jnp.float32)        # (2,) -> SMEM

    itemsize = jnp.dtype(out_dtype).itemsize
    vmem_bytes = (2 * tile_n * tile_r * itemsize          # double-buffered output
                  + 2 * 8 * tile_r * 4                    # val_range blocks
                  + 2 * tile_n * 128 * 4                  # geom_mean blocks (lane-padded)
                  + (1 << 20))                            # slack

    out = pl.pallas_call(
        _dist_gaussian_kernel,
        out_shape=jax.ShapeDtypeStruct((N, R), out_dtype),
        grid_spec=pltpu.PrefetchScalarGridSpec(
            num_scalar_prefetch=0,
            grid=(grid_n, grid_r),
            in_specs=[
                pl.BlockSpec(memory_space=pltpu.MemorySpace.SMEM),   # per-tile skip flags
                pl.BlockSpec(memory_space=pltpu.MemorySpace.SMEM),   # [dx, const]
                pl.BlockSpec((1, tile_r), lambda i, j: (0, j)),      # val_range row
                pl.BlockSpec((tile_n, 1), lambda i, j: (i, 0)),      # geom_mean col
            ],
            out_specs=pl.BlockSpec((tile_n, tile_r), lambda i, j: (i, j)),
        ),
        compiler_params=pltpu.CompilerParams(
            dimension_semantics=("parallel", "parallel"),
            vmem_limit_bytes=max(32 * 1024 * 1024, int(vmem_bytes)),
        ),
        cost_estimate=pl.CostEstimate(
            flops=30 * N * R,
            transcendentals=2 * N * R,
            bytes_accessed=N * R * itemsize + 4 * (N + R),
        ),
    )(skip, params, vr2, gm2)
    return out


def _reference(val_range, geom_mean, *, dx, sigma):
    const = 1.0 / (sigma * math.sqrt(2.0))
    vr = val_range[None, :]
    gm = geom_mean[:, None]
    right = jax.lax.erf((vr + dx - gm) * const)
    left = jax.lax.erf((vr - gm) * const)
    return (right - left) / 2


# TODO(synk): DistFuncGaussian.div (analytic derivative used by the Jacobian
# path) is not part of forward() and is not implemented here.

if __name__ == "__main__":
    key = jax.random.PRNGKey(0)
    k1, k2, k3 = jax.random.split(key, 3)

    sigma = 0.25
    dx = 0.05

    # Case 1: ragged shapes -> masked edge blocks, no post-kernel slice.
    R1, N1 = 200, 12
    vr_a = jnp.linspace(0.0, 4.0, R1, dtype=jnp.float32)
    gm_a = jax.random.uniform(k1, (N1,), jnp.float32, 0.5, 3.5)
    out_a = jax.block_until_ready(dist_func_gaussian(vr_a, gm_a, dx=dx, sigma=sigma))
    ref_a = _reference(vr_a, gm_a, dx=dx, sigma=sigma)
    assert out_a.shape == (N1, R1), out_a.shape
    assert jnp.allclose(out_a, ref_a, atol=1e-5, rtol=1e-5), \
        float(jnp.max(jnp.abs(out_a - ref_a)))

    # Case 2: tile-aligned shapes -> exercises the >=2-parallel-blocks split.
    R2, N2 = 1024, 64
    vr_b = jnp.linspace(0.0, 6.0, R2, dtype=jnp.float32)
    gm_b = jax.random.uniform(k2, (N2,), jnp.float32, 0.5, 5.5)
    out_b = jax.block_until_ready(dist_func_gaussian(vr_b, gm_b, dx=dx, sigma=sigma))
    ref_b = _reference(vr_b, gm_b, dx=dx, sigma=sigma)
    assert out_b.shape == (N2, R2), out_b.shape
    assert jnp.allclose(out_b, ref_b, atol=1e-5, rtol=1e-5), \
        float(jnp.max(jnp.abs(out_b - ref_b)))

    # Case 3: narrow Gaussian (sigma << span) with explicit small tiles ->
    # exercises the per-tile saturation-skip fast path alongside compute tiles.
    R3, N3 = 1024, 16
    sigma3, dx3 = 0.02, 0.01
    vr_c = jnp.linspace(0.0, 10.0, R3, dtype=jnp.float32)
    gm_c = jax.random.uniform(k3, (N3,), jnp.float32, 4.9, 5.1)
    out_c = jax.block_until_ready(
        dist_func_gaussian(vr_c, gm_c, dx=dx3, sigma=sigma3, tile_n=8, tile_r=128))
    ref_c = _reference(vr_c, gm_c, dx=dx3, sigma=sigma3)
    assert out_c.shape == (N3, R3), out_c.shape
    assert jnp.allclose(out_c, ref_c, atol=1e-5, rtol=1e-5), \
        float(jnp.max(jnp.abs(out_c - ref_c)))

    print("KERNEL_OK")
</pallas_src>

<mosaic_0001>
module attributes {stable_mosaic.version = 11 : i64} {
  func.func @_dist_gaussian_kernel(%arg0: i32, %arg1: i32, %arg2: memref<4xi32, #tpu.memory_space<smem>>, %arg3: memref<2xf32, #tpu.memory_space<smem>>, %arg4: memref<1x128xf32, #tpu.memory_space<vmem>>, %arg5: memref<8x1xf32, #tpu.memory_space<vmem>>, %arg6: memref<8x128xf32, #tpu.memory_space<vmem>>) attributes {dimension_semantics = [#tpu.dimension_semantics<parallel>, #tpu.dimension_semantics<parallel>], iteration_bounds = array<i64: 2, 2>, scalar_prefetch = 0 : i64, scratch_operands = 0 : i64, tpu.core_type = #tpu.core_type<tc>, window_params = [{transform_indices = @transform_0, window_bounds = array<i64: 4>}, {transform_indices = @transform_1, window_bounds = array<i64: 2>}, {transform_indices = @transform_2, window_bounds = array<i64: 1, 128>}, {transform_indices = @transform_3, window_bounds = array<i64: 8, 1>}, {transform_indices = @transform_4, window_bounds = array<i64: 8, 128>}]} {
    %c2_i32 = arith.constant 2 : i32
    %0 = arith.muli %arg0, %c2_i32 : i32
    %1 = arith.addi %0, %arg1 : i32
    %2 = arith.index_cast %1 : i32 to index
    %3 = memref.load %arg2[%2] : memref<4xi32, #tpu.memory_space<smem>>
    %c0_i32 = arith.constant 0 : i32
    %4 = arith.cmpi ne, %3, %c0_i32 : i32
    %5 = arith.extui %4 : i1 to i32
    %c0_i32_0 = arith.constant 0 : i32
    %6 = arith.cmpi ne, %5, %c0_i32_0 : i32
    scf.if %6 {
      %cst = arith.constant 0.000000e+00 : f32
      %10 = vector.broadcast %cst : f32 to vector<8x128xf32>
      %c0 = arith.constant 0 : index
      %c0_3 = arith.constant 0 : index
      %11 = vector.load %arg6[%c0, %c0_3] : memref<8x128xf32, #tpu.memory_space<vmem>>, vector<8x128xf32>
      tpu.vector_store %arg6[%c0, %c0_3], %10 {strides = array<i32>} : memref<8x128xf32, #tpu.memory_space<vmem>>, vector<8x128xf32>,
    } else {
    }
    %c0_i32_1 = arith.constant 0 : i32
    %7 = arith.cmpi eq, %3, %c0_i32_1 : i32
    %8 = arith.extui %7 : i1 to i32
    %c0_i32_2 = arith.constant 0 : i32
    %9 = arith.cmpi ne, %8, %c0_i32_2 : i32
    scf.if %9 {
      %c0 = arith.constant 0 : index
      %10 = memref.load %arg3[%c0] : memref<2xf32, #tpu.memory_space<smem>>
      %c1 = arith.constant 1 : index
      %11 = memref.load %arg3[%c1] : memref<2xf32, #tpu.memory_space<smem>>
      %c0_3 = arith.constant 0 : index
      %c0_4 = arith.constant 0 : index
      %12 = vector.load %arg4[%c0_3, %c0_4] : memref<1x128xf32, #tpu.memory_space<vmem>>, vector<1x128xf32>
      %c0_5 = arith.constant 0 : index
      %c0_6 = arith.constant 0 : index
      %13 = vector.load %arg5[%c0_5, %c0_6] : memref<8x1xf32, #tpu.memory_space<vmem>>, vector<8x1xf32>
      %14 = vector.broadcast %10 : f32 to vector<1x128xf32>
      %15 = arith.addf %12, %14 : vector<1x128xf32>
      %16 = vector.broadcast %15 : vector<1x128xf32> to vector<8x128xf32>
      %17 = vector.broadcast %13 : vector<8x1xf32> to vector<8x128xf32>
      %18 = arith.subf %16, %17 : vector<8x128xf32>
      %19 = vector.broadcast %11 : f32 to vector<8x128xf32>
      %20 = arith.mulf %18, %19 : vector<8x128xf32>
      %21 = vector.broadcast %12 : vector<1x128xf32> to vector<8x128xf32>
      %22 = vector.broadcast %13 : vector<8x1xf32> to vector<8x128xf32>
      %23 = arith.subf %21, %22 : vector<8x128xf32>
      %24 = vector.broadcast %11 : f32 to vector<8x128xf32>
      %25 = arith.mulf %23, %24 : vector<8x128xf32>
      %26 = math.erf %20 : vector<8x128xf32>
      %27 = math.erf %25 : vector<8x128xf32>
      %28 = arith.subf %26, %27 : vector<8x128xf32>
      %cst = arith.constant 5.000000e-01 : f32
      %29 = vector.broadcast %cst : f32 to vector<8x128xf32>
      %30 = arith.mulf %28, %29 : vector<8x128xf32>
      %c0_7 = arith.constant 0 : index
      %c0_8 = arith.constant 0 : index
      %31 = vector.load %arg6[%c0_7, %c0_8] : memref<8x128xf32, #tpu.memory_space<vmem>>, vector<8x128xf32>
      tpu.vector_store %arg6[%c0_7, %c0_8], %30 {strides = array<i32>} : memref<8x128xf32, #tpu.memory_space<vmem>>, vector<8x128xf32>,
    } else {
    }
    return
  }
  func.func @transform_0(%arg0: i32, %arg1: i32) -> i32 {
    %c0_i32 = arith.constant 0 : i32
    %c0_i32_0 = arith.constant 0 : i32
    return %c0_i32 : i32
  }
  func.func @transform_1(%arg0: i32, %arg1: i32) -> i32 {
    %c0_i32 = arith.constant 0 : i32
    %c0_i32_0 = arith.constant 0 : i32
    return %c0_i32 : i32
  }
  func.func @transform_2(%arg0: i32, %arg1: i32) -> (i32, i32) {
    %c0_i32 = arith.constant 0 : i32
    %c0_i32_0 = arith.constant 0 : i32
    return %c0_i32, %arg1 : i32, i32
  }
  func.func @transform_3(%arg0: i32, %arg1: i32) -> (i32, i32) {
    %c0_i32 = arith.constant 0 : i32
    %c0_i32_0 = arith.constant 0 : i32
    return %arg0, %c0_i32 : i32, i32
  }
  func.func @transform_4(%arg0: i32, %arg1: i32) -> (i32, i32) {
    %c0_i32 = arith.constant 0 : i32
    return %arg0, %arg1 : i32, i32
  }
}

</mosaic_0001>

<bundles_post_ra>
// kernel: tpu_custom_call.1
= control target key start
LH: loop header
LB: loop body
LE: loop exit
PB: predicated region body
PF: predicated region fallthrough
CT: control target
= control target key end

     0   :  { %s880_s0 = inlined_call_operand.vmem [shape: s32[4], index: 0, kind: input, shape index: {}]   ;;  %s881_s1 = inlined_call_operand.vmem [shape: f32[2], index: 1, kind: input, shape index: {}]   ;;  %s882_s2 = inlined_call_operand.vmem [shape: f32[1,256], index: 2, kind: input, shape index: {}]   ;;  %s883_s3 = inlined_call_operand.vmem [shape: f32[16,1], index: 3, kind: input, shape index: {}]   ;;  %s884_s4 = inlined_call_operand.hbm [shape: f32[12,200], index: 4, kind: output, shape index: {}]  }
   0x1   :  { %889 = sst [smem:[#allocation11_spill]] %s880_s0 }
   0x2   :  { %9 = vsyncpa [#allocation4], 0 }
   0x3   :  { %10 = vsyncpa [#allocation6], 0 }
   0x4   :  { %11 = vsyncpa [#allocation3], 0 }
   0x5   :  { %13 = vsyncpa [#allocation3 + $0x1], 0  ;;  %s695_s15 = smov 0   ;;  %s697_s16 = smov 0  }
   0x6   :  { %s699_s17 = smov 0   ;;  %s701_s18 = smov 0  }
   0x7   :  { %s703_s19 = smov 0   ;;  %s705_s20 = smov 0  }
   0x8   :  { %s707_s21 = smov 0   ;;  %s709_s22 = smov 0  }
   0x9 LB: > { %s412_s23 = sadd.s32 4294967295, %s663_s22   ;;  %s413_s24 = sadd.s32 4294967294, %s663_s22   ;;  %s663_s22 = sphi %s709_s22, %s19_s22   ;;  %s659_s21 = sphi %s707_s21, %s906_s21   ;;  %s655_s20 = sphi %s705_s20, %s905_s20   ;;  %s651_s19 = sphi %s703_s19, %s904_s19   ;;  %s647_s18 = sphi %s701_s18, %s903_s18   ;;  %s643_s17 = sphi %s699_s17, %s902_s17   ;;  %s639_s16 = sphi %s697_s16, %s901_s16   ;;  %s635_s15 = sphi %s695_s15, %s900_s15  }
   0xa   : > { %s28_s25 = sadd.s32 1, %s655_s20  ;;  %s31_s26 = sadd.s32 1, %s659_s21 }
   0xb   : > { %p29_p0 = scmp.ge.s32.totalorder %s28_s25, 2  ;;  %s134_s27 = sadd.s32 1, %s643_s17 }
   0xc   : > { %p144_p1 = scmp.ne.s32.totalorder %s643_s17, %s639_s16  ;;  %p145_p2 = scmp.eq.s32.totalorder %s412_s23, 3 }
   0xd   : > { %s908_s25 = smov (%p29_p0, %s28_s25), 0  ;;  %s910_s26 = smov (!%p29_p0, %s31_s26), %s659_s21 }
   0xe   : > { %s130_s28 = ssub.s32 %s655_s20, %s908_s25  ;;  %p747_p3 = por %p145_p2, %p144_p1 }
   0xf   : > { %p33_p4 = scmp.ge.s32.totalorder %s910_s26, 2  ;;  %p150_p5 = scmp.ne.s32.totalorder %s639_s16, %s635_s15 }
  0x10   : > { %s890_s29 = scalar_select %p747_p3, 1, 0 }
  0x11   : > { %p151_p6 = scmp.eq.s32.totalorder %s413_s24, 3  ;;  %p414_p7 = scmp.ge.s32.totalorder %s663_s22, 1 }
  0x12   : > { %s912_s26 = smov (%p33_p4, %s910_s26), 0  ;;  %p158_p9 = scmp.lt.s32.totalorder %s663_s22, 5 }
  0x13   : > { %p756_p8 = por %p151_p6, %p150_p5  ;;  %s129_s5 = ssub.s32 %s659_s21, %s912_s26 }
  0x14   : > { %s131_s6 = sor.u32 %s130_s28, %s129_s5  ;;  %p763_p10 = pnand %p414_p7, %p158_p9 }
  0x15   : > { %s891_s30 = scalar_select %p756_p8, 1, 0 }
  0x16   : > { %s892_s7 = scalar_select %p763_p10, 1, 0 }
  0x17   : > { %p132_p11 = scmp.eq.s32.totalorder %s131_s6, 0  ;;  %p767_p12 = scmp.eq.s32.totalorder %s412_s23, 0 }
  0x18   : > { %p442_p13 = pneg %p763_p10  ;;  %s894_s0 = sld [smem:[#allocation11_spill]] }
  0x19   : > { %s893_s8 = scalar_select %p767_p12, 1, 0 }
  0x1a   : > { %s777_s12 = scalar_select %p132_p11, %s643_s17, %s134_s27  }
  0x1b   : > { %p781_p0 = pnand %p767_p12, %p442_p13  ;;  %s182_s24 = sshll.u32 %s881_s1, 4  ;;  %s183_s24 = int_to_ptr.vmem [resolvable:$true] %s182_s24 }
  0x1d   : > { %p533_p2 = pneg %p781_p0 }
  0x1e   : > { %s171_s11 = sshll.u32 %s894_s0, 4  ;;  %s172_s11 = int_to_ptr.vmem [resolvable:$true] %s171_s11 }
  0x1f   : > { %s531_s28 = scalar_lea.vmem %s172_s11, 16  ;;  %p539_p6 = scmp.lt.s32.totalorder %s172_s11, %s172_s11 }
  0x20   : > { %p532_p1 = scmp.ne.s32.totalorder %s172_s11, %s531_s28  ;;  %p540_p7 = scmp.lt.s32.totalorder %s531_s28, %s531_s28 }
  0x22   : > { %p534_p4 = pnand %p533_p2, %p532_p1  ;;  %p541_p9 = por %p540_p7, %p539_p6 }
  0x24   : > { %p535_p5 = pneg %p534_p4 }
  0x26   : > { %p542_p11 = pnand %p541_p9, %p535_p5 }
  0x28   : > { %545 = shalt.err (!%p542_p11)
}
  0x29   : > { %s665_s27 = smov [#allocation2]   ;;  %s546_s5 = scalar_lea.vmem %s183_s24, 16 }
  0x2a   : > { %445 = dma.vmem_to_smem (!%p781_p0), %s172_s11, 16, %s665_s27, [#allocation4]  }
  0x2b   : > { %p547_p13 = scmp.ne.s32.totalorder %s183_s24, %s546_s5  ;;  %p554_p12 = scmp.lt.s32.totalorder %s183_s24, %s183_s24 }
  0x2c   : > { %p555_p10 = scmp.lt.s32.totalorder %s546_s5, %s546_s5 }
  0x2d   : > { %p549_p8 = pnand %p547_p13, %p533_p2 }
  0x2e   : > { %p556_p1 = por %p555_p10, %p554_p12 }
  0x2f   : > { %p550_p3 = pneg %p549_p8 }
  0x31   : > { %p557_p4 = pnand %p556_p1, %p550_p3 }
  0x33   : > { %560 = shalt.err (!%p557_p4)
}
  0x34   : > { %s666_s6 = smov [#allocation5]   ;;  %p896_p5 = scmp.ne.s32.totalorder %s892_s7, 0 }
  0x35   : > { %448 = dma.vmem_to_smem (!%p781_p0), %s183_s24, 16, %s666_s6, [#allocation6]  }
  0x36   : > { %208 = sbr.rel (%p896_p5) target bundleno = 264 (0x108), region = 36  ;;  %p897_p6 = scmp.ne.s32.totalorder (!%p896_p5), %s893_s8, 0 }
  0x3d   : > { %622 = dma.done.wait (%p897_p6), [#allocation4], 16  }
  0x3e   : > { %624 = vsyncadd (%p897_p6), [#allocation4], 4294967280 }
  0x3f   : > { %626 = dma.done.wait (%p897_p6), [#allocation6], 16  }
  0x40   : > { %628 = vsyncadd (%p897_p6), [#allocation6], 4294967280 }
  0x41   : > { %218 = sfence }
  0x42   : > { %s238_s7 = sand.u32 1, %s639_s16   ;;  %p241_p3 = scmp.lt.s32.totalorder %s647_s18, 1 }
  0x43   : > { %s421_s9 = sshll.u32 %s238_s7, 3  ;;  %p244_p8 = scmp.lt.s32.totalorder %s651_s19, 1 }
  0x44   : > { %s423_s10 = sshll.u32 %s651_s19, 1  ;;  %s822_s0 = scalar_lea.vmem [#allocation7], %s421_s9 }
  0x45   : > { %s242_s11 = scalar_select %p241_p3, %s647_s18, 1 }
  0x46   : > { %s914_s19 = smov (!%p244_p8, %s651_s19), 1  ;;  %s816_s23 = sadd.s32 %s647_s18, %s423_s10 }
  0x47   : > { %s243_s14 = scalar_lea.vmem %s882_s2, %s242_s11  ;;  %s422_s24 = sshll.u32 %s914_s19, 3 }
  0x48   : > { %s250_s28 = sld [smem:[#allocation2 + %s816_s23]]  ;;  %s247_s6 = scalar_lea.vmem %s883_s3, %s422_s24 }
  0x4e   : > { %p424_p10 = scmp.eq.s32.totalorder %s250_s28, 0 }
  0x4f   : > { %v667_v0 = vmov (!%p424_p10), 0.0  }
  0x50   : > { %254 = sbr.rel (%p424_p10) target bundleno = 87 (0x57), region = 48  ;;  %255 = vst [vmem:[%s822_s0] sm:$0xff] (!%p424_p10), %v667_v0 }
  0x57 PF: > { %p425_p12 = scmp.ne.s32.totalorder %s250_s28, 0 }
  0x58   : > { %v263_v1 = vld [vmem:[%s247_s6] sm:$0xff] (!%p425_p12)  ;;  %v668_v2 = vmov (!%p425_p12), 0   ;;  %s260_s18 = sld [smem:[#allocation5]] (!%p425_p12)  ;;  %v267_v3 = vlaneseq (!%p425_p12)  ;;  %s426_s19 = sld [smem:[#allocation5 + $0x1]] (!%p425_p12) }
  0x59   : > { %259 = sbr.rel (%p425_p12) target bundleno = 239 (0xef), region = 52  ;;  %526 = vset.pattern.permute.xlu0 (!%p425_p12), %v668_v2  ;;  %v262_v5 = vld [vmem:[%s243_s14] sm:$0x1] (!%p425_p12) }
  0x5a   : > { %274 = vperm.xlu0 (!%p425_p12), %526, %v263_v1   ;;  %v268_v4 = vshrl.u32 (!%p425_p12), %v267_v3, 7 }
  0x5c   : > { %v269_v7 = vsub.s32 (!%p425_p12), 0, %v268_v4 }
  0x5e   : > { %v264_v6 = vstv (!%p425_p12), %s260_s18  ;;  %v284_v10 = vrot.slane (!%p425_p12), %v262_v5, %v269_v7  ;;  %v278_v12 = vstv (!%p425_p12), %s426_s19 }
  0x5f   : > { %v265_v8 = vadd.f32 (!%p425_p12), %v264_v6, %v262_v5 }
  0x61   : > { %v270_v9 = vrot.slane %v265_v8, %v269_v7 }
  0xd9   : > { %v275_v11 = vpop.permute.xlu0 %274 }
  0xda   : > { %v277_v13 = vsub.f32 %v270_v9, %v275_v11  ;;  %v286_v14 = vsub.f32 %v284_v10, %v275_v11 }
  0xdc   : > { %v279_v15 = vmul.f32 %v278_v12, %v277_v13  ;;  %v287_v16 = vmul.f32 %v286_v14, %v278_v12 }
  0xde   : > { %527 = verf.f32 %v279_v15 }
  0xdf   : > { %529 = verf.f32 %v287_v16 }
  0xe8   : > { %v528_v17 = vpop.eup %527 }
  0xe9   : > { %v530_v18 = vpop.eup %529 }
  0xea   : > { %v290_v19 = vsub.f32 %v528_v17, %v530_v18 }
  0xec   : > { %v291_v20 = vmul.f32 0.5, %v290_v19 }
  0xee   : > { %292 = vst [vmem:[%s822_s0] sm:$0xff] %v291_v20 }
  0xef PF: > { %s429_s9 = sshll.u32 %s816_s23, 7  ;;  %s309_s8 = sshll.u32 %s822_s0, 4  ;;  %s310_s8 = int_to_ptr.vmem [resolvable:$true] %s309_s8 }
  0xf0   : > { %s830_s13 = scalar_lea.hbm %s884_s4, %s429_s9  ;;  %s294_s14 = scalar_lea.sflag [#allocation3], %s238_s7 }
  0xf1   : > { %s561_s24 = scalar_lea.vmem %s310_s8, 128  ;;  %p898_p2 = scmp.ne.s32.totalorder %s890_s29, 0 }
  0xf2   : > { %p562_p0 = scmp.ne.s32.totalorder %s310_s8, %s561_s24  ;;  %s669_s28 = smov [#allocation7]  }
  0xf3   : > { %s565_s27 = sshll.u32 %s669_s28, 4  ;;  %s566_s27 = int_to_ptr.vmem [resolvable:$false] %s565_s27 }
  0xf4   : > { %p563_p7 = pnand %p562_p0, %p898_p2  ;;  %s567_s5 = scalar_lea.vmem %s566_s27, 256 }
  0xf5   : > { %p568_p11 = scmp.lt.s32.totalorder %s310_s8, %s566_s27  ;;  %p569_p13 = scmp.lt.s32.totalorder %s567_s5, %s561_s24 }
  0xf6   : > { %p564_p9 = pneg %p563_p7 }
  0xf7   : > { %p570_p1 = por %p569_p13, %p568_p11 }
  0xf9   : > { %p571_p4 = pnand %p570_p1, %p564_p9 }
  0xfb   : > { %574 = shalt.err (!%p571_p4)
}
  0xfc   : > { %s575_s0 = scalar_lea.hbm %s830_s13, 128  ;;  %s579_s6 = scalar_lea.hbm %s884_s4, 512 }
  0xfd   : > { %p576_p5 = scmp.ne.s32.totalorder %s830_s13, %s575_s0  ;;  %p580_p8 = scmp.lt.u32.totalorder %s830_s13, %s884_s4 }
  0xfe   : > { %p581_p10 = scmp.lt.u32.totalorder %s579_s6, %s575_s0  ;;  %p583_p0 = scmp.lt.u32.totalorder %s575_s0, %s830_s13 }
  0xff   : > { %p577_p6 = pnand %p576_p5, %p898_p2 }
 0x100   : > { %p582_p12 = por %p581_p10, %p580_p8 }
 0x101   : > { %p578_p3 = pneg %p577_p6 }
 0x102   : > { %p584_p7 = por %p583_p0, %p582_p12 }
 0x104   : > { %p585_p9 = pnand %p584_p7, %p578_p3 }
 0x106   : > { %588 = shalt.err (!%p585_p9)
}
 0x107   : > { %440 = dma.vmem_to_hbm [thread:$0]  (%p898_p2), %s310_s8, 128, %s830_s13, %s294_s14  }
 0x108 PF: > { %p457_p11 = scmp.ge.s32.totalorder %s663_s22, 2  ;;  %s321_s9 = sand.u32 1, %s635_s15  }
 0x109   : > { %p899_p13 = scmp.ne.s32.totalorder %s891_s30, 0  ;;  %s322_s10 = scalar_lea.sflag [#allocation3], %s321_s9 }
 0x10b   : > { %p450_p1 = pnand %p457_p11, %p899_p13 }
 0x10d   : > { %630 = dma.done.wait (!%p450_p1), %s322_s10, 128  }
 0x10e   : > { %632 = vsyncadd (!%p450_p1), %s322_s10, 4294967168  ;;  %s19_s22 = sadd.s32 1, %s663_s22   ;;  %s900_s15 = smov %s639_s16 }
 0x10f   : > { %p16_p4 = scmp.ge.s32.totalorder %s19_s22, 6   ;;  %s901_s16 = smov %s643_s17 }
 0x110   : > { %s902_s17 = smov %s777_s12  ;;  %s903_s18 = smov %s655_s20 }
 0x111   : > { %s904_s19 = smov %s659_s21  ;;  %s905_s20 = smov %s908_s25 }
 0x112   : > { %s906_s21 = smov %s912_s26  ;;  %18 = sbr.rel (!%p16_p4) target bundleno = 9 (0x9), region = 91 }
 0x119   :  { %327 = vsyncpa [#allocation3], 1 }
 0x11a   :  { %329 = vsyncpa [#allocation3 + $0x1], 1 }
 0x11b   :  { %330 = vsyncpa [#allocation4], 1 }
 0x11c   :  { %332 = vsyncpa [#allocation4 + $0x1], 1 }
 0x11d   :  { %333 = vsyncpa [#allocation6], 1 }

</bundles_post_ra>
